<compile_context>
chip_gen: v7x
topology: tpu7x:2x2x1
jax: 0.10.0
libtpu: 0.0.40
codegen_flags: <defaults>
</compile_context>

<pallas_src>
import functools

import jax
import jax.numpy as jnp
from jax.experimental import pallas as pl
from jax.experimental.pallas import tpu as pltpu


def _combined_loss_kernel(pred_ref, tgt_ref,                                # inputs  (per-sample tiles)
                          inter_ref, psum_ref, tsum_ref, ce_ref, bnd_ref,   # outputs (per-sample stats)
                          inter_acc, psum_acc, tsum_acc, ce_acc, bnd_acc,   # scratch
                          *, row_w):
    i = pl.program_id(1)
    n_tiles = pl.num_programs(1)

    # ---- init per-sample accumulators on the first spatial tile ----
    @pl.when(i == 0)
    def _():
        inter_acc[...] = jnp.zeros_like(inter_acc)
        psum_acc[...] = jnp.zeros_like(psum_acc)
        tsum_acc[...] = jnp.zeros_like(tsum_acc)
        ce_acc[...] = jnp.zeros_like(ce_acc)
        bnd_acc[...] = jnp.zeros_like(bnd_acc)

    preds = pred_ref[...].astype(jnp.float32)          # (C, TS)  f32 compute, bf16/f32 stream
    tgt = tgt_ref[...].astype(jnp.int32)               # (1, TS)  int8 stream -> int32
    C, TS = preds.shape

    # ---- vectorized one-hot: class-id iota along the sublane (class) axis ----
    class_ids = jax.lax.broadcasted_iota(jnp.int32, (C, TS), 0)
    onehot = (tgt == class_ids).astype(jnp.float32)    # (C, TS)

    # ---- numerically stable softmax over the class axis (tile-local only) ----
    m = jnp.max(preds, axis=0, keepdims=True)          # (1, TS)
    ex = jnp.exp(preds - m)                            # (C, TS)  EUP
    sum_ex = jnp.sum(ex, axis=0, keepdims=True)        # (1, TS)
    inv = pl.reciprocal(sum_ex, approx=True)           # EUP slot
    inv = inv * (2.0 - sum_ex * inv)                   # one Newton step -> full f32 accuracy
    p = ex * inv                                       # softmax probs (C, TS)

    # ---- dice statistics: one lane-axis reduction each, straight into (C, 1) ----
    inter_acc[...] += jnp.sum(p * onehot, axis=1, keepdims=True)
    psum_acc[...] += jnp.sum(p, axis=1, keepdims=True)
    tsum_acc[...] += jnp.sum(onehot, axis=1, keepdims=True)

    # ---- CE numerator as a lane-vector accumulator (no per-step cross-lane reduce) ----
    logit_t = jnp.sum(preds * onehot, axis=0, keepdims=True)    # (1, TS)
    lse = m + jnp.log(sum_ex)                                   # (1, TS)
    ce_acc[...] += lse - logit_t

    # ---- boundary matches (tgt[h+1,w] - tgt[h,w] == 1) within the tile ----
    # Roll-wrap rows and tile seams are corrected once in the wrapper.
    if TS > row_w:
        rolled = pltpu.roll(tgt, shift=TS - row_w, axis=1)      # rolled[j] = tgt[(j + W) mod TS]
        bnd_acc[...] += ((rolled - tgt) == 1).astype(jnp.float32)

    # ---- per-sample finalize on the last spatial tile ----
    @pl.when(i == n_tiles - 1)
    def _():
        inter_ref[...] = inter_acc[...]
        psum_ref[...] = psum_acc[...]
        tsum_ref[...] = tsum_acc[...]
        ce_ref[...] = jnp.sum(ce_acc[...], keepdims=True)
        bnd_ref[...] = jnp.sum(bnd_acc[...], keepdims=True)


def _vmem_capacity_bytes():
    try:
        cap = int(pltpu.get_tpu_info().vmem_capacity_bytes)
        if cap > 0:
            return cap
    except Exception:
        pass
    return 64 * 1024 * 1024


def _streamed_bytes(block_h, W, C, pred_itemsize, tgt_itemsize):
    ts = block_h * W
    # double-buffered streamed input tiles + lane-vector scratch
    return 2 * ts * (C * pred_itemsize + tgt_itemsize) + 2 * ts * 4


def _choose_block_h(C, H, W, pred_itemsize, tgt_itemsize, budget_bytes):
    """Largest row-tile TH dividing H whose flattened tile is lane-dense
    (TH*W % 128 == 0, or the full spatial extent) and whose double-buffered
    working set fits the budget."""
    legal = []
    for th in range(1, H + 1):
        if H % th:
            continue
        ts = th * W
        if ts % 128 != 0 and ts != H * W:
            continue
        legal.append(th)
    within = [th for th in legal
              if _streamed_bytes(th, W, C, pred_itemsize, tgt_itemsize) <= budget_bytes]
    return max(within) if within else min(legal)


def combined_loss(predictions, targets, weight_channel_cross, weight_channel_dice,
                  weight_boundary_cross=1.0, smooth=1e-4, block_h=None):
    """Returns (cross_entropy_loss, dice_loss) as float32 scalars.

    predictions: (N, C, H, W) float (bf16 recommended; cast to f32 inside the kernel)
    targets:     (N, H, W) integer class labels (C <= 127)
    """
    N, C, H, W = predictions.shape
    assert C <= 127, "targets are streamed as int8"
    sp = H * W
    pred_itemsize = jnp.dtype(predictions.dtype).itemsize

    cap = _vmem_capacity_bytes()
    budget = max(8 << 20, min(cap // 3, 48 << 20))
    if block_h is None:
        block_h = _choose_block_h(C, H, W, pred_itemsize, 1, budget)
    assert H % block_h == 0, "block_h must divide H"
    ts = block_h * W
    assert ts == sp or ts % 128 == 0, "spatial tile must be lane-dense or full extent"
    n_tiles = sp // ts
    need = _streamed_bytes(block_h, W, C, pred_itemsize, 1)
    vmem_limit = int(min(cap, max(32 << 20, 2 * need + (16 << 20))))

    # Lane-dense flattening of the spatial dims (metadata-only reshape).
    preds_flat = predictions.reshape(N, C, sp)                   # keep caller dtype (bf16 ok)
    tgt_flat = targets.reshape(N, 1, sp).astype(jnp.int8)        # small int8 stream

    kernel = functools.partial(_combined_loss_kernel, row_w=W)

    cost = pl.CostEstimate(
        flops=14 * N * C * sp,
        transcendentals=N * C * sp + 2 * N * sp,
        bytes_accessed=int(preds_flat.size) * pred_itemsize + int(tgt_flat.size)
        + 4 * (3 * N * C + 2 * N),
    )

    out_shapes = (
        jax.ShapeDtypeStruct((N, C, 1), jnp.float32),   # inter  (softmax ∩ target) per (n, c)
        jax.ShapeDtypeStruct((N, C, 1), jnp.float32),   # psum   (softmax mass)     per (n, c)
        jax.ShapeDtypeStruct((N, C, 1), jnp.float32),   # tsum   (label counts)     per (n, c)
        jax.ShapeDtypeStruct((N, 1, 1), jnp.float32),   # CE numerator per sample
        jax.ShapeDtypeStruct((N, 1, 1), jnp.float32),   # boundary matches (uncorrected) per sample
    )
    out_specs = (
        pl.BlockSpec((None, C, 1), lambda n, i: (n, 0, 0)),
        pl.BlockSpec((None, C, 1), lambda n, i: (n, 0, 0)),
        pl.BlockSpec((None, C, 1), lambda n, i: (n, 0, 0)),
        pl.BlockSpec((None, 1, 1), lambda n, i: (n, 0, 0)),
        pl.BlockSpec((None, 1, 1), lambda n, i: (n, 0, 0)),
    )

    inter, psum, tsum, ce_num, bnd_raw = pl.pallas_call(
        kernel,
        out_shape=out_shapes,
        grid=(N, n_tiles),
        in_specs=[
            pl.BlockSpec((None, C, ts), lambda n, i: (n, 0, i)),   # logits tile (per sample)
            pl.BlockSpec((None, 1, ts), lambda n, i: (n, 0, i)),   # int8 target tile (per sample)
        ],
        out_specs=out_specs,
        scratch_shapes=[
            pltpu.VMEM((C, 1), jnp.float32),    # inter accumulator
            pltpu.VMEM((C, 1), jnp.float32),    # psum accumulator
            pltpu.VMEM((C, 1), jnp.float32),    # tsum accumulator
            pltpu.VMEM((1, ts), jnp.float32),   # CE numerator lane-vector accumulator
            pltpu.VMEM((1, ts), jnp.float32),   # boundary-match lane-vector accumulator
        ],
        compiler_params=pltpu.CompilerParams(
            dimension_semantics=("parallel", "arbitrary"),   # batch parallel (v7x 2 TCs), tiles sequential
            vmem_limit_bytes=vmem_limit),
        cost_estimate=cost,
    )(preds_flat, tgt_flat)

    # ---------- tiny finalize in the wrapper (per review: no streamed weight blocks) ----------
    inter = inter[:, :, 0]          # (N, C)
    psum = psum[:, :, 0]
    tsum = tsum[:, :, 0]
    ce_num = ce_num[:, 0, 0]        # (N,)
    bnd_raw = bnd_raw[:, 0, 0]      # (N,)

    # Boundary correction: remove the in-tile roll-wrap matches, add the true
    # tile-seam matches (only 2 rows of the small int targets per tile).
    t32 = targets.astype(jnp.int32).reshape(N, n_tiles, block_h, W)
    first = t32[:, :, 0, :]                     # first row of each tile
    last = t32[:, :, block_h - 1, :]            # last row of each tile
    spurious = jnp.sum((first - last) == 1).astype(jnp.float32)
    if n_tiles > 1:
        seam = jnp.sum((first[:, 1:, :] - last[:, :-1, :]) == 1).astype(jnp.float32)
    else:
        seam = jnp.zeros((), jnp.float32)
    bnd_total = jnp.sum(bnd_raw) - spurious + seam

    num_px = float(N * H * W)
    wcross = weight_channel_cross.astype(jnp.float32).reshape(C)
    # max over channels of onehot*w equals max(w[target], 0) for C > 1
    wch = wcross if C == 1 else jnp.maximum(wcross, 0.0)
    weight_sum = num_px + float(weight_boundary_cross) * bnd_total + jnp.sum(tsum * wch[None, :])
    ce_mean = jnp.sum(ce_num) / num_px
    ce_loss = ce_mean * weight_sum

    wdice = weight_channel_dice.astype(jnp.float32).reshape(C)
    dice_nc = 2.0 * inter / (psum + tsum + float(smooth))     # (N, C)
    dice_c = jnp.mean(dice_nc, axis=0)
    wd = 1.0 + wdice
    wd = wd / jnp.sum(wd)
    dice_loss = jnp.sum(wd * (1.0 - dice_c))
    return ce_loss, dice_loss


def _reference(preds, tgt, wcross, wdice, wb=1.0, smooth=1e-4):
    """Pure-JAX reference mirroring the PyTorch semantics."""
    N, C, H, W = preds.shape
    onehot = jax.nn.one_hot(tgt, C, axis=1, dtype=jnp.float32)          # (N,C,H,W)
    logp = jax.nn.log_softmax(preds, axis=1)
    ce_mean = -jnp.mean(jnp.sum(logp * onehot, axis=1))
    diff = tgt[:, 1:, :] - tgt[:, :-1, :]
    boundary = jnp.pad((diff == 1).astype(jnp.float32), ((0, 0), (0, 1), (0, 0)))
    wch = jnp.max(onehot * wcross[None, :, None, None], axis=1)
    weight = 1.0 + wb * boundary + wch
    ce_loss = ce_mean * jnp.sum(weight)

    sm = jax.nn.softmax(preds, axis=1)
    inter = jnp.sum(sm * onehot, axis=(2, 3))
    psum = jnp.sum(sm, axis=(2, 3))
    tsum = jnp.sum(onehot, axis=(2, 3))
    dice_c = jnp.mean(2.0 * inter / (psum + tsum + smooth), axis=0)
    wd = 1.0 + wdice
    wd = wd / jnp.sum(wd)
    dice_loss = jnp.sum(wd * (1.0 - dice_c))
    return ce_loss, dice_loss


if __name__ == "__main__":
    N, C, H, W = 2, 9, 16, 16          # num_classes = 9 (module default)

    key = jax.random.PRNGKey(0)
    k1, k2 = jax.random.split(key)
    predictions = jax.random.normal(k1, (N, C, H, W), dtype=jnp.float32)
    targets = jax.random.randint(k2, (N, H, W), 0, C, dtype=jnp.int32)

    # Non-trivial (but deterministic) module parameters.
    weight_channel_cross = 0.5 + jnp.arange(C, dtype=jnp.float32) / C
    weight_channel_dice = jnp.arange(C, dtype=jnp.float32) / 10.0
    weight_boundary_cross = 0.7

    ce_ref, dl_ref = _reference(predictions, targets,
                                weight_channel_cross, weight_channel_dice,
                                weight_boundary_cross)

    # 1) Tiled path: 2 spatial tiles of 8 rows (128 lanes) -> accumulators + seam correction.
    ce1, dl1 = combined_loss(predictions, targets, weight_channel_cross,
                             weight_channel_dice, weight_boundary_cross, block_h=8)
    # 2) Auto-tiled path: single lane-dense 256-lane tile.
    ce2, dl2 = combined_loss(predictions, targets, weight_channel_cross,
                             weight_channel_dice, weight_boundary_cross)
    jax.block_until_ready((ce1, dl1, ce2, dl2))

    for ce_loss, dice_loss in ((ce1, dl1), (ce2, dl2)):
        assert jnp.allclose(ce_loss, ce_ref, rtol=2e-4, atol=2e-4), (ce_loss, ce_ref)
        assert jnp.allclose(dice_loss, dl_ref, rtol=2e-4, atol=2e-4), (dice_loss, dl_ref)

    # 3) bf16 logits stream (recommended caller contract); reference on the same rounded logits.
    preds_bf16 = predictions.astype(jnp.bfloat16)
    ce_ref_b, dl_ref_b = _reference(preds_bf16.astype(jnp.float32), targets,
                                    weight_channel_cross, weight_channel_dice,
                                    weight_boundary_cross)
    ce3, dl3 = combined_loss(preds_bf16, targets, weight_channel_cross,
                             weight_channel_dice, weight_boundary_cross, block_h=8)
    jax.block_until_ready((ce3, dl3))
    assert jnp.allclose(ce3, ce_ref_b, rtol=1e-3, atol=1e-3), (ce3, ce_ref_b)
    assert jnp.allclose(dl3, dl_ref_b, rtol=1e-3, atol=1e-3), (dl3, dl_ref_b)

    print("KERNEL_OK")
</pallas_src>

<mosaic_0001>
module attributes {stable_mosaic.version = 11 : i64} {
  func.func @_combined_loss_kernel(%arg0: i32, %arg1: i32, %arg2: memref<1x9x128xf32, #tpu.memory_space<vmem>>, %arg3: memref<1x1x128xi8, #tpu.memory_space<vmem>>, %arg4: memref<1x9x1xf32, #tpu.memory_space<vmem>>, %arg5: memref<1x9x1xf32, #tpu.memory_space<vmem>>, %arg6: memref<1x9x1xf32, #tpu.memory_space<vmem>>, %arg7: memref<1x1x1xf32, #tpu.memory_space<vmem>>, %arg8: memref<1x1x1xf32, #tpu.memory_space<vmem>>, %arg9: memref<9x1xf32, #tpu.memory_space<vmem>>, %arg10: memref<9x1xf32, #tpu.memory_space<vmem>>, %arg11: memref<9x1xf32, #tpu.memory_space<vmem>>, %arg12: memref<1x128xf32, #tpu.memory_space<vmem>>, %arg13: memref<1x128xf32, #tpu.memory_space<vmem>>) attributes {dimension_semantics = [#tpu.dimension_semantics<parallel>, #tpu.dimension_semantics<arbitrary>], iteration_bounds = array<i64: 2, 2>, scalar_prefetch = 0 : i64, scratch_operands = 5 : i64, tpu.core_type = #tpu.core_type<tc>, window_params = [{transform_indices = @transform_0, window_bounds = array<i64: 1, 9, 128>}, {transform_indices = @transform_1, window_bounds = array<i64: 1, 1, 128>}, {transform_indices = @transform_2, window_bounds = array<i64: 1, 9, 1>}, {transform_indices = @transform_3, window_bounds = array<i64: 1, 9, 1>}, {transform_indices = @transform_4, window_bounds = array<i64: 1, 9, 1>}, {transform_indices = @transform_5, window_bounds = array<i64: 1, 1, 1>}, {transform_indices = @transform_6, window_bounds = array<i64: 1, 1, 1>}]} {
    %c0_i32 = arith.constant 0 : i32
    %0 = arith.cmpi eq, %arg1, %c0_i32 : i32
    %1 = arith.extui %0 : i1 to i32
    %c0_i32_0 = arith.constant 0 : i32
    %2 = arith.cmpi ne, %1, %c0_i32_0 : i32
    scf.if %2 {
      %cst_34 = arith.constant 0.000000e+00 : f32
      %64 = vector.broadcast %cst_34 : f32 to vector<9x1xf32>
      %c0_35 = arith.constant 0 : index
      %c0_36 = arith.constant 0 : index
      %65 = vector.load %arg9[%c0_35, %c0_36] : memref<9x1xf32, #tpu.memory_space<vmem>>, vector<9x1xf32>
      tpu.vector_store %arg9[%c0_35, %c0_36], %64 {strides = array<i32>} : memref<9x1xf32, #tpu.memory_space<vmem>>, vector<9x1xf32>,
      %cst_37 = arith.constant 0.000000e+00 : f32
      %66 = vector.broadcast %cst_37 : f32 to vector<9x1xf32>
      %c0_38 = arith.constant 0 : index
      %c0_39 = arith.constant 0 : index
      %67 = vector.load %arg10[%c0_38, %c0_39] : memref<9x1xf32, #tpu.memory_space<vmem>>, vector<9x1xf32>
      tpu.vector_store %arg10[%c0_38, %c0_39], %66 {strides = array<i32>} : memref<9x1xf32, #tpu.memory_space<vmem>>, vector<9x1xf32>,
      %cst_40 = arith.constant 0.000000e+00 : f32
      %68 = vector.broadcast %cst_40 : f32 to vector<9x1xf32>
      %c0_41 = arith.constant 0 : index
      %c0_42 = arith.constant 0 : index
      %69 = vector.load %arg11[%c0_41, %c0_42] : memref<9x1xf32, #tpu.memory_space<vmem>>, vector<9x1xf32>
      tpu.vector_store %arg11[%c0_41, %c0_42], %68 {strides = array<i32>} : memref<9x1xf32, #tpu.memory_space<vmem>>, vector<9x1xf32>,
      %cst_43 = arith.constant 0.000000e+00 : f32
      %70 = vector.broadcast %cst_43 : f32 to vector<1x128xf32>
      %c0_44 = arith.constant 0 : index
      %c0_45 = arith.constant 0 : index
      %71 = vector.load %arg12[%c0_44, %c0_45] : memref<1x128xf32, #tpu.memory_space<vmem>>, vector<1x128xf32>
      tpu.vector_store %arg12[%c0_44, %c0_45], %70 {strides = array<i32>} : memref<1x128xf32, #tpu.memory_space<vmem>>, vector<1x128xf32>,
      %cst_46 = arith.constant 0.000000e+00 : f32
      %72 = vector.broadcast %cst_46 : f32 to vector<1x128xf32>
      %c0_47 = arith.constant 0 : index
      %c0_48 = arith.constant 0 : index
      %73 = vector.load %arg13[%c0_47, %c0_48] : memref<1x128xf32, #tpu.memory_space<vmem>>, vector<1x128xf32>
      tpu.vector_store %arg13[%c0_47, %c0_48], %72 {strides = array<i32>} : memref<1x128xf32, #tpu.memory_space<vmem>>, vector<1x128xf32>,
    } else {
    }
    %c0 = arith.constant 0 : index
    %c0_1 = arith.constant 0 : index
    %c0_2 = arith.constant 0 : index
    %3 = vector.load %arg2[%c0, %c0_1, %c0_2] : memref<1x9x128xf32, #tpu.memory_space<vmem>>, vector<1x9x128xf32>
    %4 = vector.shape_cast %3 : vector<1x9x128xf32> to vector<9x128xf32>
    %c0_3 = arith.constant 0 : index
    %c0_4 = arith.constant 0 : index
    %c0_5 = arith.constant 0 : index
    %5 = vector.load %arg3[%c0_3, %c0_4, %c0_5] : memref<1x1x128xi8, #tpu.memory_space<vmem>>, vector<1x1x128xi8>
    %6 = vector.shape_cast %5 : vector<1x1x128xi8> to vector<1x128xi8>
    %7 = arith.extsi %6 : vector<1x128xi8> to vector<1x128xi32>
    %8 = tpu.iota {dimensions = array<i32: 0>} : vector<9x128xi32>
    %9 = vector.broadcast %7 : vector<1x128xi32> to vector<9x128xi32>
    %10 = arith.cmpi eq, %9, %8 : vector<9x128xi32>
    %11 = arith.extui %10 : vector<9x128xi1> to vector<9x128xi32>
    %12 = arith.sitofp %11 : vector<9x128xi32> to vector<9x128xf32>
    %cst = arith.constant dense<0xFF800000> : vector<128xf32>
    %13 = vector.multi_reduction <maximumf>, %4, %cst [0] : vector<9x128xf32> to vector<128xf32>
    %14 = vector.shape_cast %13 : vector<128xf32> to vector<1x128xf32>
    %15 = vector.broadcast %14 : vector<1x128xf32> to vector<9x128xf32>
    %16 = arith.subf %4, %15 : vector<9x128xf32>
    %17 = math.exp %16 : vector<9x128xf32>
    %cst_6 = arith.constant dense<0.000000e+00> : vector<128xf32>
    %18 = vector.multi_reduction <add>, %17, %cst_6 [0] : vector<9x128xf32> to vector<128xf32>
    %19 = vector.shape_cast %18 : vector<128xf32> to vector<1x128xf32>
    %20 = tpu.reciprocal %19 {approx = true} : vector<1x128xf32> -> vector<1x128xf32>
    %21 = arith.mulf %19, %20 : vector<1x128xf32>
    %cst_7 = arith.constant 2.000000e+00 : f32
    %22 = vector.broadcast %cst_7 : f32 to vector<1x128xf32>
    %23 = arith.subf %22, %21 : vector<1x128xf32>
    %24 = arith.mulf %20, %23 : vector<1x128xf32>
    %25 = vector.broadcast %24 : vector<1x128xf32> to vector<9x128xf32>
    %26 = arith.mulf %17, %25 : vector<9x128xf32>
    %c0_8 = arith.constant 0 : index
    %c0_9 = arith.constant 0 : index
    %27 = vector.load %arg9[%c0_8, %c0_9] : memref<9x1xf32, #tpu.memory_space<vmem>>, vector<9x1xf32>
    %28 = arith.mulf %26, %12 : vector<9x128xf32>
    %cst_10 = arith.constant dense<0.000000e+00> : vector<9xf32>
    %29 = vector.multi_reduction <add>, %28, %cst_10 [1] : vector<9x128xf32> to vector<9xf32>
    %30 = vector.shape_cast %29 : vector<9xf32> to vector<9x1xf32>
    %31 = arith.addf %27, %30 : vector<9x1xf32>
    %c0_11 = arith.constant 0 : index
    %c0_12 = arith.constant 0 : index
    %32 = vector.load %arg9[%c0_11, %c0_12] : memref<9x1xf32, #tpu.memory_space<vmem>>, vector<9x1xf32>
    tpu.vector_store %arg9[%c0_11, %c0_12], %31 {strides = array<i32>} : memref<9x1xf32, #tpu.memory_space<vmem>>, vector<9x1xf32>,
    %c0_13 = arith.constant 0 : index
    %c0_14 = arith.constant 0 : index
    %33 = vector.load %arg10[%c0_13, %c0_14] : memref<9x1xf32, #tpu.memory_space<vmem>>, vector<9x1xf32>
    %cst_15 = arith.constant dense<0.000000e+00> : vector<9xf32>
    %34 = vector.multi_reduction <add>, %26, %cst_15 [1] : vector<9x128xf32> to vector<9xf32>
    %35 = vector.shape_cast %34 : vector<9xf32> to vector<9x1xf32>
    %36 = arith.addf %33, %35 : vector<9x1xf32>
    %c0_16 = arith.constant 0 : index
    %c0_17 = arith.constant 0 : index
    %37 = vector.load %arg10[%c0_16, %c0_17] : memref<9x1xf32, #tpu.memory_space<vmem>>, vector<9x1xf32>
    tpu.vector_store %arg10[%c0_16, %c0_17], %36 {strides = array<i32>} : memref<9x1xf32, #tpu.memory_space<vmem>>, vector<9x1xf32>,
    %c0_18 = arith.constant 0 : index
    %c0_19 = arith.constant 0 : index
    %38 = vector.load %arg11[%c0_18, %c0_19] : memref<9x1xf32, #tpu.memory_space<vmem>>, vector<9x1xf32>
    %cst_20 = arith.constant dense<0.000000e+00> : vector<9xf32>
    %39 = vector.multi_reduction <add>, %12, %cst_20 [1] : vector<9x128xf32> to vector<9xf32>
    %40 = vector.shape_cast %39 : vector<9xf32> to vector<9x1xf32>
    %41 = arith.addf %38, %40 : vector<9x1xf32>
    %c0_21 = arith.constant 0 : index
    %c0_22 = arith.constant 0 : index
    %42 = vector.load %arg11[%c0_21, %c0_22] : memref<9x1xf32, #tpu.memory_space<vmem>>, vector<9x1xf32>
    tpu.vector_store %arg11[%c0_21, %c0_22], %41 {strides = array<i32>} : memref<9x1xf32, #tpu.memory_space<vmem>>, vector<9x1xf32>,
    %43 = arith.mulf %4, %12 : vector<9x128xf32>
    %cst_23 = arith.constant dense<0.000000e+00> : vector<128xf32>
    %44 = vector.multi_reduction <add>, %43, %cst_23 [0] : vector<9x128xf32> to vector<128xf32>
    %45 = vector.shape_cast %44 : vector<128xf32> to vector<1x128xf32>
    %46 = math.log %19 : vector<1x128xf32>
    %47 = arith.addf %14, %46 : vector<1x128xf32>
    %c0_24 = arith.constant 0 : index
    %c0_25 = arith.constant 0 : index
    %48 = vector.load %arg12[%c0_24, %c0_25] : memref<1x128xf32, #tpu.memory_space<vmem>>, vector<1x128xf32>
    %49 = arith.subf %47, %45 : vector<1x128xf32>
    %50 = arith.addf %48, %49 : vector<1x128xf32>
    %c0_26 = arith.constant 0 : index
    %c0_27 = arith.constant 0 : index
    %51 = vector.load %arg12[%c0_26, %c0_27] : memref<1x128xf32, #tpu.memory_space<vmem>>, vector<1x128xf32>
    tpu.vector_store %arg12[%c0_26, %c0_27], %50 {strides = array<i32>} : memref<1x128xf32, #tpu.memory_space<vmem>>, vector<1x128xf32>,
    %c112_i32 = arith.constant 112 : i32
    %52 = tpu.dynamic_rotate %7 by %c112_i32 dim 1 : vector<1x128xi32>, i32 -> vector<1x128xi32>
    %c0_28 = arith.constant 0 : index
    %c0_29 = arith.constant 0 : index
    %53 = vector.load %arg13[%c0_28, %c0_29] : memref<1x128xf32, #tpu.memory_space<vmem>>, vector<1x128xf32>
    %54 = arith.subi %52, %7 : vector<1x128xi32>
    %c1_i32 = arith.constant 1 : i32
    %55 = vector.broadcast %c1_i32 : i32 to vector<1x128xi32>
    %56 = arith.cmpi eq, %54, %55 : vector<1x128xi32>
    %57 = arith.extui %56 : vector<1x128xi1> to vector<1x128xi32>
    %58 = arith.sitofp %57 : vector<1x128xi32> to vector<1x128xf32>
    %59 = arith.addf %53, %58 : vector<1x128xf32>
    %c0_30 = arith.constant 0 : index
    %c0_31 = arith.constant 0 : index
    %60 = vector.load %arg13[%c0_30, %c0_31] : memref<1x128xf32, #tpu.memory_space<vmem>>, vector<1x128xf32>
    tpu.vector_store %arg13[%c0_30, %c0_31], %59 {strides = array<i32>} : memref<1x128xf32, #tpu.memory_space<vmem>>, vector<1x128xf32>,
    %c1_i32_32 = arith.constant 1 : i32
    %61 = arith.cmpi eq, %arg1, %c1_i32_32 : i32
    %62 = arith.extui %61 : i1 to i32
    %c0_i32_33 = arith.constant 0 : i32
    %63 = arith.cmpi ne, %62, %c0_i32_33 : i32
    scf.if %63 {
      %c0_34 = arith.constant 0 : index
      %c0_35 = arith.constant 0 : index
      %64 = vector.load %arg9[%c0_34, %c0_35] : memref<9x1xf32, #tpu.memory_space<vmem>>, vector<9x1xf32>
      %c0_36 = arith.constant 0 : index
      %c0_37 = arith.constant 0 : index
      %c0_38 = arith.constant 0 : index
      %65 = vector.load %arg4[%c0_36, %c0_37, %c0_38] : memref<1x9x1xf32, #tpu.memory_space<vmem>>, vector<1x9x1xf32>
      %66 = vector.shape_cast %65 : vector<1x9x1xf32> to vector<9x1xf32>
      %67 = vector.shape_cast %64 : vector<9x1xf32> to vector<1x9x1xf32>
      tpu.vector_store %arg4[%c0_36, %c0_37, %c0_38], %67 {strides = array<i32>} : memref<1x9x1xf32, #tpu.memory_space<vmem>>, vector<1x9x1xf32>,
      %c0_39 = arith.constant 0 : index
      %c0_40 = arith.constant 0 : index
      %68 = vector.load %arg10[%c0_39, %c0_40] : memref<9x1xf32, #tpu.memory_space<vmem>>, vector<9x1xf32>
      %c0_41 = arith.constant 0 : index
      %c0_42 = arith.constant 0 : index
      %c0_43 = arith.constant 0 : index
      %69 = vector.load %arg5[%c0_41, %c0_42, %c0_43] : memref<1x9x1xf32, #tpu.memory_space<vmem>>, vector<1x9x1xf32>
      %70 = vector.shape_cast %69 : vector<1x9x1xf32> to vector<9x1xf32>
      %71 = vector.shape_cast %68 : vector<9x1xf32> to vector<1x9x1xf32>
      tpu.vector_store %arg5[%c0_41, %c0_42, %c0_43], %71 {strides = array<i32>} : memref<1x9x1xf32, #tpu.memory_space<vmem>>, vector<1x9x1xf32>,
      %c0_44 = arith.constant 0 : index
      %c0_45 = arith.constant 0 : index
      %72 = vector.load %arg11[%c0_44, %c0_45] : memref<9x1xf32, #tpu.memory_space<vmem>>, vector<9x1xf32>
      %c0_46 = arith.constant 0 : index
      %c0_47 = arith.constant 0 : index
      %c0_48 = arith.constant 0 : index
      %73 = vector.load %arg6[%c0_46, %c0_47, %c0_48] : memref<1x9x1xf32, #tpu.memory_space<vmem>>, vector<1x9x1xf32>
      %74 = vector.shape_cast %73 : vector<1x9x1xf32> to vector<9x1xf32>
      %75 = vector.shape_cast %72 : vector<9x1xf32> to vector<1x9x1xf32>
      tpu.vector_store %arg6[%c0_46, %c0_47, %c0_48], %75 {strides = array<i32>} : memref<1x9x1xf32, #tpu.memory_space<vmem>>, vector<1x9x1xf32>,
      %c0_49 = arith.constant 0 : index
      %c0_50 = arith.constant 0 : index
      %76 = vector.load %arg12[%c0_49, %c0_50] : memref<1x128xf32, #tpu.memory_space<vmem>>, vector<1x128xf32>
      %77 = vector.shape_cast %76 : vector<1x128xf32> to vector<1x1x128xf32>
      %cst_51 = arith.constant dense<0.000000e+00> : vector<1xf32>
      %78 = vector.multi_reduction <add>, %77, %cst_51 [1, 2] : vector<1x1x128xf32> to vector<1xf32>
      %79 = vector.shape_cast %78 : vector<1xf32> to vector<1x1x1xf32>
      %80 = vector.extract %79[0, 0, 0] : f32 from vector<1x1x1xf32>
      %81 = vector.broadcast %80 : f32 to vector<1x1xf32>
      %c0_52 = arith.constant 0 : index
      %c0_53 = arith.constant 0 : index
      %c0_54 = arith.constant 0 : index
      %82 = vector.load %arg7[%c0_52, %c0_53, %c0_54] : memref<1x1x1xf32, #tpu.memory_space<vmem>>, vector<1x1x1xf32>
      %83 = vector.shape_cast %82 : vector<1x1x1xf32> to vector<1x1xf32>
      %84 = vector.shape_cast %81 : vector<1x1xf32> to vector<1x1x1xf32>
      tpu.vector_store %arg7[%c0_52, %c0_53, %c0_54], %84 {strides = array<i32>} : memref<1x1x1xf32, #tpu.memory_space<vmem>>, vector<1x1x1xf32>,
      %c0_55 = arith.constant 0 : index
      %c0_56 = arith.constant 0 : index
      %85 = vector.load %arg13[%c0_55, %c0_56] : memref<1x128xf32, #tpu.memory_space<vmem>>, vector<1x128xf32>
      %86 = vector.shape_cast %85 : vector<1x128xf32> to vector<1x1x128xf32>
      %cst_57 = arith.constant dense<0.000000e+00> : vector<1xf32>
      %87 = vector.multi_reduction <add>, %86, %cst_57 [1, 2] : vector<1x1x128xf32> to vector<1xf32>
      %88 = vector.shape_cast %87 : vector<1xf32> to vector<1x1x1xf32>
      %89 = vector.extract %88[0, 0, 0] : f32 from vector<1x1x1xf32>
      %90 = vector.broadcast %89 : f32 to vector<1x1xf32>
      %c0_58 = arith.constant 0 : index
      %c0_59 = arith.constant 0 : index
      %c0_60 = arith.constant 0 : index
      %91 = vector.load %arg8[%c0_58, %c0_59, %c0_60] : memref<1x1x1xf32, #tpu.memory_space<vmem>>, vector<1x1x1xf32>
      %92 = vector.shape_cast %91 : vector<1x1x1xf32> to vector<1x1xf32>
      %93 = vector.shape_cast %90 : vector<1x1xf32> to vector<1x1x1xf32>
      tpu.vector_store %arg8[%c0_58, %c0_59, %c0_60], %93 {strides = array<i32>} : memref<1x1x1xf32, #tpu.memory_space<vmem>>, vector<1x1x1xf32>,
    } else {
    }
    return
  }
  func.func @transform_0(%arg0: i32, %arg1: i32) -> (i32, i32, i32) {
    %c0_i32 = arith.constant 0 : i32
    %c0_i32_0 = arith.constant 0 : i32
    return %arg0, %c0_i32, %arg1 : i32, i32, i32
  }
  func.func @transform_1(%arg0: i32, %arg1: i32) -> (i32, i32, i32) {
    %c0_i32 = arith.constant 0 : i32
    %c0_i32_0 = arith.constant 0 : i32
    return %arg0, %c0_i32, %arg1 : i32, i32, i32
  }
  func.func @transform_2(%arg0: i32, %arg1: i32) -> (i32, i32, i32) {
    %c0_i32 = arith.constant 0 : i32
    %c0_i32_0 = arith.constant 0 : i32
    %c0_i32_1 = arith.constant 0 : i32
    return %arg0, %c0_i32, %c0_i32_0 : i32, i32, i32
  }
  func.func @transform_3(%arg0: i32, %arg1: i32) -> (i32, i32, i32) {
    %c0_i32 = arith.constant 0 : i32
    %c0_i32_0 = arith.constant 0 : i32
    %c0_i32_1 = arith.constant 0 : i32
    return %arg0, %c0_i32, %c0_i32_0 : i32, i32, i32
  }
  func.func @transform_4(%arg0: i32, %arg1: i32) -> (i32, i32, i32) {
    %c0_i32 = arith.constant 0 : i32
    %c0_i32_0 = arith.constant 0 : i32
    %c0_i32_1 = arith.constant 0 : i32
    return %arg0, %c0_i32, %c0_i32_0 : i32, i32, i32
  }
  func.func @transform_5(%arg0: i32, %arg1: i32) -> (i32, i32, i32) {
    %c0_i32 = arith.constant 0 : i32
    %c0_i32_0 = arith.constant 0 : i32
    %c0_i32_1 = arith.constant 0 : i32
    return %arg0, %c0_i32, %c0_i32_0 : i32, i32, i32
  }
  func.func @transform_6(%arg0: i32, %arg1: i32) -> (i32, i32, i32) {
    %c0_i32 = arith.constant 0 : i32
    %c0_i32_0 = arith.constant 0 : i32
    %c0_i32_1 = arith.constant 0 : i32
    return %arg0, %c0_i32, %c0_i32_0 : i32, i32, i32
  }
}

</mosaic_0001>

<bundles_post_ra>
// kernel: tpu_custom_call.1
= control target key start
LH: loop header
LB: loop body
LE: loop exit
PB: predicated region body
PF: predicated region fallthrough
CT: control target
= control target key end

     0   :  { %s1105_s0 = inlined_call_operand.vmem [shape: f32[2,9,256], index: 0, kind: input, shape index: {}]   ;;  %s1106_s1 = inlined_call_operand.vmem [shape: s8[2,1,256], index: 1, kind: input, shape index: {}]   ;;  %s1107_s2 = inlined_call_operand.vmem [shape: f32[2,9,1], index: 2, kind: output, shape index: {0}]   ;;  %s1108_s3 = inlined_call_operand.vmem [shape: f32[2,9,1], index: 3, kind: output, shape index: {1}]   ;;  %s1109_s4 = inlined_call_operand.vmem [shape: f32[2,9,1], index: 4, kind: output, shape index: {2}]   ;;  %s1110_s5 = inlined_call_operand.vmem [shape: f32[2,1,1], index: 5, kind: output, shape index: {3}]   ;;  %s1111_s6 = inlined_call_operand.vmem [shape: f32[2,1,1], index: 6, kind: output, shape index: {4}]  }
   0x1   :  { %1114 = sst [smem:[#allocation10_spill]] %s1105_s0 }
   0x2   :  { %1115 = sst [smem:[#allocation11_spill]] %s1107_s2 }
   0x3   :  { %s936_s21 = smov 0   ;;  %s938_s22 = smov 0  }
   0x4   :  { %s940_s23 = smov 0   ;;  %s942_s24 = smov 0  }
   0x5   :  { %s944_s25 = smov 0   ;;  %s946_s26 = smov 0  }
   0x6   :  { %s948_s27 = smov 0  }
   0x7 LB: > { %s26_s28 = sadd.s32 1, %s888_s25  ;;  %s29_s29 = sadd.s32 1, %s892_s26  ;;  %s896_s27 = sphi %s948_s27, %s17_s27   ;;  %s892_s26 = sphi %s946_s26, %s1127_s26   ;;  %s888_s25 = sphi %s944_s25, %s1126_s25   ;;  %s884_s24 = sphi %s942_s24, %s1125_s24   ;;  %s880_s23 = sphi %s940_s23, %s1124_s23   ;;  %s876_s22 = sphi %s938_s22, %s1123_s22   ;;  %s872_s21 = sphi %s936_s21, %s1122_s21  }
   0x8   : > { %p27_p0 = scmp.ge.s32.totalorder %s26_s28, 2  ;;  %p45_p1 = scmp.ne.s32.totalorder %s876_s22, %s872_s21 }
   0x9   : > { %p46_p2 = scmp.eq.s32.totalorder %s896_s27, 0  ;;  %s38_s9 = sadd.s32 1, %s876_s22 }
   0xa   : > { %s1129_s28 = smov (%p27_p0, %s26_s28), 0  ;;  %s1131_s29 = smov (!%p27_p0, %s29_s29), %s892_s26 }
   0xb   : > { %1116 = sst [smem:[#allocation8_spill]] %s1129_s28  ;;  %p47_p3 = por %p46_p2, %p45_p1 }
   0xc   : > { %p31_p4 = scmp.ge.s32.totalorder %s1131_s29, 2  ;;  %s34_s30 = ssub.s32 %s888_s25, %s1129_s28 }
   0xd   : > { %p748_p6 = scmp.ge.s32.totalorder %s896_s27, 4 }
   0xe   : > { %s1133_s29 = smov (%p31_p4, %s1131_s29), 0 }
   0xf   : > { %1117 = sst [smem:[#allocation9_spill]] %s1133_s29  ;;  %s33_s7 = ssub.s32 %s892_s26, %s1133_s29 }
  0x10   : > { %s35_s8 = sor.u32 %s34_s30, %s33_s7  ;;  %229 = sbr.rel (%p748_p6) target bundleno = 34 (0x22), region = 16 }
  0x11   : > { %p36_p5 = scmp.eq.s32.totalorder %s35_s8, 0 }
  0x13   : > { %s987_s10 = scalar_select %p36_p5, %s876_s22, %s38_s9  }
  0x17   : > { %232 = sbr.rel (!%p47_p3) target bundleno = 34 (0x22), region = 20  ;;  %s234_s11 = sand.u32 (%p47_p3), 1, %s876_s22  }
  0x18   : > { %s750_s12 = sshll.u32 (%p47_p3), %s892_s26, 2  ;;  %s749_s13 = sshll.u32 (%p47_p3), %s234_s11, 4 }
  0x19   : > { %s238_s14 = sadd.s32 (%p47_p3), %s888_s25, %s750_s12  ;;  %s1118_s0 = sld [smem:[#allocation10_spill]] (%p47_p3) }
  0x1a   : > { %s751_s15 = sshll.u32 (%p47_p3), %s238_s14, 3  ;;  %s236_s19 = scalar_lea.vmem (%p47_p3), [#allocation7], %s749_s13 }
  0x1f   : > { %s240_s18 = scalar_lea.vmem %s1118_s0, %s751_s15 }
  0x20   : > { %v270_v0 = vld [vmem:[%s240_s18] sm:$0xff]  ;;  %v272_v1 = vld [vmem:[%s240_s18 + $0x10] sm:$0xff] }
  0x21   : > { %271 = vst [vmem:[%s236_s19] sm:$0xff] %v270_v0  ;;  %273 = vst [vmem:[%s236_s19 + $0x8] sm:$0xff] %v272_v1 }
  0x22 PF: > { %p752_p7 = scmp.ge.s32.totalorder %s896_s27, 1  ;;  %p288_p8 = scmp.lt.s32.totalorder %s896_s27, 5 }
  0x24   : > { %p289_p9 = pnand %p752_p7, %p288_p8 }
  0x25   : > { %s295_s20 = sand.u32 (!%p289_p9), 1, %s872_s21   ;;  %p347_p10 = scmp.lt.s32.totalorder (!%p289_p9), %s884_s24, 1 }
  0x26   : > { %292 = sbr.rel (%p289_p9) target bundleno = 491 (0x1eb), region = 62  ;;  %s1000_s30 = sshll.u32 (!%p289_p9), %s295_s20, 4 }
  0x27   : > { %p349_p11 = scmp.lt.s32.totalorder (!%p289_p9), %s880_s23, 1  ;;  %s1119_s2 = sld [smem:[#allocation11_spill]] (!%p289_p9) }
  0x28   : > { %s297_s21 = scalar_lea.vmem (!%p289_p9), [#allocation7], %s1000_s30  ;;  %p761_p12 = scmp.ne.s32.totalorder (!%p289_p9), %s880_s23, 0 }
  0x2d   : > { %s1135_s24 = smov (!%p347_p10, %s884_s24), 1  ;;  %378 = sbr.rel (%p761_p12) target bundleno = 52 (0x34), region = 70 }
  0x2e   : > { %s350_s7 = scalar_select %p349_p11, %s880_s23, 1 }
  0x2f   : > { %s754_s8 = sshll.u32 %s1135_s24, 1  ;;  %s768_s9 = sshll.u32 %s1135_s24, 4  ;;  %vm379_vm0 = vcmask (!%p761_p12), 7168   ;;  %vm381_vm1 = vcmask (!%p761_p12), 0   ;;  %v898_v2 = vmov (!%p761_p12), 0.0  }
  0x30   : > { %s352_s11 = sadd.s32 %s754_s8, %s350_s7  ;;  %s1012_s14 = scalar_lea.vmem %s1119_s2, %s768_s9  ;;  %380 = vst.msk [vmem:[#allocation2] sm:$0xff] (!%p761_p12), %vm379_vm0, %v898_v2  ;;  %383 = vst.msk [vmem:[#allocation3] sm:$0xff] (!%p761_p12), %vm379_vm0, %v898_v2 }
  0x31   : > { %s353_s16 = scalar_lea.vmem %s1106_s1, %s352_s11  ;;  %s1020_s19 = scalar_lea.vmem %s1108_s3, %s768_s9  ;;  %385 = vst.msk [vmem:[#allocation4] sm:$0xff] (!%p761_p12), %vm379_vm0, %v898_v2  ;;  %387 = vst [vmem:[#allocation5] sm:$0x1] (!%p761_p12), %v898_v2 }
  0x32   : > { %s1025_s29 = scalar_lea.vmem %s1109_s4, %s768_s9  ;;  %s371_s12 = scalar_lea.vmem %s1110_s5, %s1135_s24  ;;  %388 = vst [vmem:[#allocation6] sm:$0x1] (!%p761_p12), %v898_v2  ;;  %382 = vst.msk [vmem:[#allocation2 + $0x8] sm:$0x1] (!%p761_p12), %vm381_vm1, %v898_v2 }
  0x33   : > { %s374_s28 = scalar_lea.vmem %s1111_s6, %s1135_s24  ;;  %384 = vst.msk [vmem:[#allocation3 + $0x8] sm:$0x1] (!%p761_p12), %vm381_vm1, %v898_v2  ;;  %386 = vst.msk [vmem:[#allocation4 + $0x8] sm:$0x1] (!%p761_p12), %vm381_vm1, %v898_v2 }
  0x34 PF: > { %v391_v3 = vld [vmem:[%s353_s16] sm:$0x1]  ;;  %v393_v4 = vlaneseq  ;;  %vm406_vm2 = vcmask 1040384   ;;  %v389_v5 = vld [vmem:[%s297_s21] sm:$0xff]  ;;  %v390_v6 = vld [vmem:[%s297_s21 + $0x8] sm:$0x1] }
  0x35   : > { %v1037_v7 = vunpack.c.0.s8 %v391_v3  ;;  %v407_v9 = vsel %vm406_vm2, %v390_v6, -inf  ;;  %v899_v15 = vmov 0.0   ;;  %s900_s0 = smov 112   ;;  %vm446_vm5 = vcmask 7168   ;;  %p765_p13 = scmp.ne.s32.totalorder %s880_s23, 1 }
  0x36   : > { %v394_v8 = vshrl.u32 %v393_v4, 7  ;;  %v408_v10 = vmax.f32 %v389_v5, %v407_v9  ;;  %vm448_vm6 = vcmask 0  }
  0x37   : > { %v450_v3 = vld [vmem:[#allocation3] sm:$0xff]  ;;  %v435_v4 = vld [vmem:[#allocation2] sm:$0xff] }
  0x38   : > { %v398_v11 = vsub.s32 0, %v394_v8  ;;  %v409_v12 = vrot.slane %v408_v10, 4  ;;  %v395_v25 = vadd.s32 8, %v394_v8  ;;  %v485_v54 = vld [vmem:[#allocation5] sm:$0x1]  ;;  %v461_v0 = vld [vmem:[#allocation4] sm:$0xff] }
  0x3a   : > { %v399_v13 = vrot.slane %v1037_v7, %v398_v11  ;;  %v410_v14 = vmax.f32 %v408_v10, %v409_v12  ;;  %v451_v9 = vld [vmem:[#allocation3 + $0x8] sm:$0x1]  ;;  %v436_v11 = vld [vmem:[#allocation2 + $0x8] sm:$0x1] }
  0x3c   : > { %vm400_vm3 = vcmp.eq.s32.totalorder %v399_v13, %v394_v8  ;;  %v411_v17 = vrot.slane %v410_v14, 2  ;;  %vm401_vm4 = vcmp.eq.s32.totalorder %v399_v13, %v395_v25 }
  0x3d   : > { %v762_v16 = vsel %vm400_vm3, 1.0, %v899_v15  ;;  %v763_v26 = vsel %vm401_vm4, 1.0, %v899_v15 }
  0x3e   : > { %463 = vadd.xlane.f32.xlu0 %v762_v16  ;;  %v412_v18 = vmax.f32 %v410_v14, %v411_v17  ;;  %v473_v27 = vmul.f32 %v763_v26, %v390_v6  ;;  %v472_v30 = vmul.f32 %v762_v16, %v389_v5  ;;  %v465_v63 = vsel %vm406_vm2, %v763_v26, 0.0 }
  0x40   : > { %v413_v19 = vrot.slane %v412_v18, 1  ;;  %v474_v32 = vsel %vm406_vm2, %v473_v27, 0.0 }
  0x41   : > { %v475_v35 = vadd.f32 %v474_v32, %v472_v30 }
  0x42   : > { %v414_v20 = vmax.f32 %v412_v18, %v413_v19 }
  0x43   : > { %v476_v38 = vrot.slane %v475_v35, 4 }
  0x44   : > { %v415_v21 = vsub.f32 %v389_v5, %v414_v20  ;;  %v416_v22 = vsub.f32 %v390_v6, %v414_v20 }
  0x45   : > { %v477_v41 = vadd.f32 %v476_v38, %v475_v35 }
  0x46   : > { %v417_v23 = vmul.f32 1.442695, %v415_v21  ;;  %v419_v24 = vmul.f32 1.442695, %v416_v22  ;;  %v491_v22 = vld [vmem:[#allocation6] sm:$0x1] }
  0x47   : > { %v478_v43 = vrot.slane %v477_v41, 2 }
  0x48   : > { %834 = vpow2.f32 %v417_v23 }
  0x49   : > { %836 = vpow2.f32 %v419_v24  ;;  %v479_v44 = vadd.f32 %v478_v43, %v477_v41 }
  0x4b   : > { %v480_v45 = vrot.slane %v479_v44, 1 }
  0x4d   : > { %v481_v50 = vadd.f32 %v480_v45, %v479_v44 }
  0x52   : > { %v835_v28 = vpop.eup %834 }
  0x53   : > { %v837_v29 = vpop.eup %836 }
  0x54   : > { %v421_v31 = vsel %vm406_vm2, %v837_v29, 0.0 }
  0x55   : > { %v422_v33 = vadd.f32 %v835_v28, %v421_v31 }
  0x57   : > { %v423_v34 = vrot.slane %v422_v33, 4 }
  0x59   : > { %v424_v36 = vadd.f32 %v423_v34, %v422_v33 }
  0x5b   : > { %v425_v37 = vrot.slane %v424_v36, 2 }
  0x5d   : > { %v426_v39 = vadd.f32 %v425_v37, %v424_v36 }
  0x5f   : > { %v427_v40 = vrot.slane %v426_v39, 1 }
  0x61   : > { %v428_v42 = vadd.f32 %v427_v40, %v426_v39 }
  0x63   : > { %838 = vrcp.f32 %v428_v42 }
  0x64   : > { %840 = vlog2.f32 %v428_v42 }
  0x6d   : > { %v839_v46 = vpop.eup %838 }
  0x6e   : > { %v841_v47 = vpop.eup %840  ;;  %v430_v48 = vmul.f32 %v839_v46, %v428_v42 }
  0x6f   : > { %v483_v49 = vmul.f32 0.6931472, %v841_v47 }
  0x70   : > { %v431_v51 = vsub.f32 2.0, %v430_v48 }
  0x71   : > { %v484_v52 = vadd.f32 %v483_v49, %v414_v20 }
  0x72   : > { %v432_v53 = vmul.f32 %v839_v46, %v431_v51 }
  0x73   : > { %v486_v55 = vsub.f32 %v484_v52, %v481_v50 }
  0x74   : > { %v433_v56 = vmul.f32 %v835_v28, %v432_v53  ;;  %v434_v57 = vmul.f32 %v837_v29, %v432_v53 }
  0x75   : > { %v487_v58 = vadd.f32 %v486_v55, %v485_v54 }
  0x76   : > { %v437_v59 = vmul.f32 %v762_v16, %v433_v56  ;;  %452 = vadd.xlane.f32.xlu1 %v433_v56  ;;  %v438_v60 = vmul.f32 %v763_v26, %v434_v57  ;;  %v454_v61 = vsel %vm406_vm2, %v434_v57, 0.0  ;;  %v462_v16 = vld [vmem:[#allocation4 + $0x8] sm:$0x1] }
  0x77   : > { %488 = vst [vmem:[#allocation5] sm:$0x1] %v487_v58 }
  0x78   : > { %439 = vadd.xlane.f32.xlu0 %v437_v59  ;;  %v441_v62 = vsel %vm406_vm2, %v438_v60, 0.0 }
  0x7a   : > { %455 = vadd.xlane.f32.xlu1 %v454_v61 }
  0x7c   : > { %442 = vadd.xlane.f32.xlu0 %v441_v62 }
  0x7e   : > { %466 = vadd.xlane.f32.xlu1 %v465_v63  ;;  %v514_v25 = vld [vmem:[#allocation5] sm:$0x1] (!%p765_p13) }
  0x92   : > { %489 = vrot.lane.b32.xlu0 %v1037_v7, %s900_s0 }
  0xcb   : > { %v464_v1 = vpop.xlane.xlu0 %463 }
  0xcc   : > { %v468_v2 = vadd.f32 %v464_v1, %v461_v0 }
  0xce   : > { %470 = vst.msk [vmem:[#allocation4] sm:$0xff] %vm446_vm5, %v468_v2 }
  0xd5   : > { %v510_v31 = vld [vmem:[#allocation4] sm:$0xff] (!%p765_p13) }
  0xd6   : > { %512 = vst.msk [vmem:[%s1025_s29] sm:$0xff] (!%p765_p13), %vm446_vm5, %v510_v31 }
 0x103   : > { %v453_v5 = vpop.xlane.xlu1 %452 }
 0x104   : > { %v457_v6 = vadd.f32 %v453_v5, %v450_v3 }
 0x105   : > { %v440_v8 = vpop.xlane.xlu0 %439 }
 0x106   : > { %v444_v10 = vadd.f32 %v440_v8, %v435_v4  ;;  %459 = vst.msk [vmem:[#allocation3] sm:$0xff] %vm446_vm5, %v457_v6 }
 0x107   : > { %v456_v12 = vpop.xlane.xlu1 %455 }
 0x108   : > { %447 = vst.msk [vmem:[#allocation2] sm:$0xff] %vm446_vm5, %v444_v10  ;;  %v458_v13 = vadd.f32 %v456_v12, %v451_v9 }
 0x109   : > { %v443_v14 = vpop.xlane.xlu0 %442 }
 0x10a   : > { %v445_v17 = vadd.f32 %v443_v14, %v436_v11  ;;  %460 = vst.msk [vmem:[#allocation3 + $0x8] sm:$0x1] %vm448_vm6, %v458_v13 }
 0x10b   : > { %v467_v18 = vpop.xlane.xlu1 %466 }
 0x10c   : > { %449 = vst.msk [vmem:[#allocation2 + $0x8] sm:$0x1] %vm448_vm6, %v445_v17  ;;  %v469_v19 = vadd.f32 %v467_v18, %v462_v16 }
 0x10d   : > { %v490_v20 = vpop.permute.xlu0 %489  ;;  %v506_v29 = vld [vmem:[#allocation3] sm:$0xff] (!%p765_p13) }
 0x10e   : > { %v492_v21 = vsub.s32 %v490_v20, %v1037_v7  ;;  %471 = vst.msk [vmem:[#allocation4 + $0x8] sm:$0x1] %vm448_vm6, %v469_v19  ;;  %501 = sbr.rel (%p765_p13) target bundleno = 491 (0x1eb), region = 74  ;;  %v515_v7 = vsel (!%p765_p13), %vm406_vm2, %v514_v25, 0.0 }
 0x10f   : > { %516 = vadd.xlane.f32.xlu0 (!%p765_p13), %v515_v7  ;;  %508 = vst.msk [vmem:[%s1020_s19] sm:$0xff] (!%p765_p13), %vm446_vm5, %v506_v29 }
 0x110   : > { %vm493_vm7 = vcmp.eq.s32.totalorder %v492_v21, 1 }
 0x111   : > { %v764_v23 = vsel %vm493_vm7, 1.0, %v899_v15  ;;  %v502_v15 = vld [vmem:[#allocation2] sm:$0xff] (!%p765_p13)  ;;  %v507_v30 = vld [vmem:[#allocation3 + $0x8] sm:$0x1] (!%p765_p13) }
 0x112   : > { %v496_v24 = vadd.f32 %v764_v23, %v491_v22  ;;  %504 = vst.msk [vmem:[%s1012_s14] sm:$0xff] (!%p765_p13), %vm446_vm5, %v502_v15 }
 0x113   : > { %v503_v28 = vld [vmem:[#allocation2 + $0x8] sm:$0x1] (!%p765_p13)  ;;  %509 = vst.msk [vmem:[%s1020_s19 + $0x8] sm:$0x1] (!%p765_p13), %vm448_vm6, %v507_v30 }
 0x114   : > { %497 = vst [vmem:[#allocation6] sm:$0x1] %v496_v24  ;;  %505 = vst.msk [vmem:[%s1012_s14 + $0x8] sm:$0x1] (!%p765_p13), %vm448_vm6, %v503_v28 }
 0x115   : > { %v511_v32 = vld [vmem:[#allocation4 + $0x8] sm:$0x1] }
 0x116   : > { %513 = vst.msk [vmem:[%s1025_s29 + $0x8] sm:$0x1] %vm448_vm6, %v511_v32 }
 0x11b   : > { %v527_v26 = vld [vmem:[#allocation6] sm:$0x1] }
 0x11c   : > { %v528_v27 = vsel %vm406_vm2, %v527_v26, 0.0 }
 0x11d   : > { %529 = vadd.xlane.f32.xlu0 %v528_v27 }
 0x19c   : > { %v517_v33 = vpop.xlane.xlu0 %516 }
 0x19d   : > { %v518_v34 = vrot.slane %v517_v33, 4 }
 0x19f   : > { %v519_v35 = vadd.f32 %v518_v34, %v517_v33 }
 0x1a1   : > { %v520_v37 = vrot.slane %v519_v35, 2 }
 0x1a3   : > { %v521_v40 = vadd.f32 %v520_v37, %v519_v35 }
 0x1a5   : > { %v522_v42 = vrot.slane %v521_v40, 1 }
 0x1a7   : > { %v523_v44 = vadd.f32 %v522_v42, %v521_v40 }
 0x1a9   : > { %771 = vpush %v523_v44 }
 0x1aa   : > { %v530_v36 = vpop.xlane.xlu0 %529 }
 0x1ab   : > { %v531_v38 = vrot.slane %v530_v36, 4 }
 0x1ad   : > { %v532_v39 = vadd.f32 %v531_v38, %v530_v36 }
 0x1af   : > { %v533_v41 = vrot.slane %v532_v39, 2 }
 0x1b1   : > { %v534_v43 = vadd.f32 %v533_v41, %v532_v39 }
 0x1b3   : > { %v535_v45 = vrot.slane %v534_v43, 1 }
 0x1b5   : > { %v536_v46 = vadd.f32 %v535_v45, %v534_v43 }
 0x1b7   : > { %773 = vpush %v536_v46 }
 0x1da   : > { %s772_s2 = spop %771 }
 0x1db   : > { %v525_v47 = vstv %s772_s2 }
 0x1dc   : > { %526 = vst.msk [vmem:[%s371_s12] sm:$0x1] %vm448_vm6, %v525_v47 }
 0x1e8   : > { %s774_s30 = spop %773 }
 0x1e9   : > { %v538_v48 = vstv %s774_s30 }
 0x1ea   : > { %539 = vst.msk [vmem:[%s374_s28] sm:$0x1] %vm448_vm6, %v538_v48 }
 0x1eb PF: > { %s17_s27 = sadd.s32 1, %s896_s27   ;;  %s1120_s14 = sld [smem:[#allocation8_spill]] }
 0x1ec   : > { %p14_p0 = scmp.ge.s32.totalorder %s17_s27, 6   ;;  %s1121_s15 = sld [smem:[#allocation9_spill]] }
 0x1ed   : > { %s1122_s21 = smov %s876_s22  ;;  %s1123_s22 = smov %s987_s10 }
 0x1ee   : > { %s1124_s23 = smov %s888_s25  ;;  %s1125_s24 = smov %s892_s26 }
 0x1ef   :  { %16 = sbr.rel (!%p14_p0) target bundleno = 7 (0x7), region = 160 }
 0x1f1   : > { %s1126_s25 = smov %s1120_s14 }
 0x1f2   : > { %s1127_s26 = smov %s1121_s15 }

</bundles_post_ra>
